<compile_context>
chip_gen: v7x
topology: tpu7x:2x2x1
jax: 0.10.0
libtpu: 0.0.40
codegen_flags: <defaults>
</compile_context>

<pallas_src>
import functools

import jax
import jax.numpy as jnp
from jax.experimental import pallas as pl
from jax.experimental.pallas import tpu as pltpu


def _ffn_kernel(x_ref, w1_ref, b1_ref, w2_ref, b2_ref, o_ref, acc_ref):
    h_idx = pl.program_id(1)

    @pl.when(h_idx == 0)
    def _():
        acc_ref[...] = jnp.zeros_like(acc_ref)

    # Linear 1 slice: [tm, E] @ [E, TH] (native dtype operands, f32 accumulate)
    h = jnp.dot(x_ref[...], w1_ref[...], preferred_element_type=jnp.float32)
    h = h + b1_ref[...].astype(jnp.float32)

    # GELU, tanh approximation (matches the PyTorch GELU module), kept in f32:
    # 0.5 * x * (1 + tanh(sqrt(2/pi) * (x + 0.044715 * x^3)))
    c = jnp.float32(0.7978845608028654)  # sqrt(2/pi)
    g = 0.5 * h * (1.0 + jnp.tanh(c * (h + 0.044715 * (h * h * h))))

    # Linear 2 partial: [tm, TH] @ [TH, E], accumulated over hidden tiles.
    acc_ref[...] += jnp.dot(g.astype(w2_ref.dtype), w2_ref[...],
                            preferred_element_type=jnp.float32)

    @pl.when(h_idx == pl.num_programs(1) - 1)
    def _():
        o_ref[...] = (acc_ref[...] + b2_ref[...].astype(jnp.float32)
                      ).astype(o_ref.dtype)


def _round_up(x, m):
    return ((x + m - 1) // m) * m


@functools.partial(jax.jit, static_argnames=("tm_max", "th_max"))
def feed_forward(x, w1, b1, w2, b2, *, tm_max=256, th_max=512):
    """x: [B, T, E]. w1: [E, 4E], b1: [4E], w2: [4E, E], b2: [E].

    Weights are stored transposed from PyTorch ([in, out]) so the kernel
    computes plain row-major matmuls.
    """
    B, T, E = x.shape
    H = w1.shape[1]
    M = B * T

    # Lane-dense / tile-friendly padded sizes.
    E_pad = _round_up(E, 128)
    tm = min(tm_max, _round_up(M, 8))          # row tile (multiple of 8)
    M_pad = _round_up(M, tm)
    TH = min(th_max, _round_up(H, 128))        # hidden tile (multiple of 128)
    H_pad = _round_up(H, TH)

    x2d = jnp.pad(x.reshape(M, E), ((0, M_pad - M), (0, E_pad - E)))
    w1p = jnp.pad(w1, ((0, E_pad - E), (0, H_pad - H)))
    b1p = jnp.pad(b1, (0, H_pad - H)).reshape(1, H_pad)
    w2p = jnp.pad(w2, ((0, H_pad - H), (0, E_pad - E)))
    b2p = jnp.pad(b2, (0, E_pad - E)).reshape(1, E_pad)

    grid = (M_pad // tm, H_pad // TH)

    out2d = pl.pallas_call(
        _ffn_kernel,
        out_shape=jax.ShapeDtypeStruct((M_pad, E_pad), x.dtype),
        grid_spec=pltpu.PrefetchScalarGridSpec(
            num_scalar_prefetch=0,
            grid=grid,
            in_specs=[
                pl.BlockSpec((tm, E_pad), lambda i, h: (i, 0)),    # x rows (constant over h)
                pl.BlockSpec((E_pad, TH), lambda i, h: (0, h)),    # W1 hidden slice
                pl.BlockSpec((1, TH), lambda i, h: (0, h)),        # b1 hidden slice
                pl.BlockSpec((TH, E_pad), lambda i, h: (h, 0)),    # W2 hidden slice
                pl.BlockSpec((1, E_pad), lambda i, h: (0, 0)),     # b2
            ],
            out_specs=pl.BlockSpec((tm, E_pad), lambda i, h: (i, 0)),
            scratch_shapes=[pltpu.VMEM((tm, E_pad), jnp.float32)],  # f32 accumulator
        ),
        compiler_params=pltpu.CompilerParams(
            dimension_semantics=("parallel", "arbitrary"),
            # Above the 16/32 MiB scoped defaults, with headroom for v7x's
            # 64 MiB physical VMEM.
            vmem_limit_bytes=48 * 1024 * 1024,
        ),
    )(x2d, w1p, b1p, w2p, b2p)

    return out2d[:M, :E].reshape(B, T, E)


def _reference(x, w1, b1, w2, b2):
    h = x @ w1 + b1
    g = 0.5 * h * (1.0 + jnp.tanh(jnp.sqrt(2.0 / jnp.pi) * (h + 0.044715 * h ** 3)))
    return g @ w2 + b2


if __name__ == "__main__":
    # Small config: batch=2, seq=8, emb_dim=32 -> hidden = 4*emb_dim = 128.
    B, T, E = 2, 8, 32
    H = 4 * E

    key = jax.random.PRNGKey(0)
    kx, k1, k2, k3, k4 = jax.random.split(key, 5)

    x = jax.random.normal(kx, (B, T, E), dtype=jnp.float32)
    # Deterministic Linear-style init (uniform +-1/sqrt(fan_in)), stored [in, out].
    w1 = jax.random.uniform(k1, (E, H), jnp.float32, -1.0, 1.0) / jnp.sqrt(E)
    b1 = jax.random.uniform(k2, (H,), jnp.float32, -1.0, 1.0) / jnp.sqrt(E)
    w2 = jax.random.uniform(k3, (H, E), jnp.float32, -1.0, 1.0) / jnp.sqrt(H)
    b2 = jax.random.uniform(k4, (E,), jnp.float32, -1.0, 1.0) / jnp.sqrt(H)

    out = feed_forward(x, w1, b1, w2, b2)
    out = jax.block_until_ready(out)

    ref = _reference(x, w1, b1, w2, b2)
    assert out.shape == (B, T, E)
    assert jnp.allclose(out, ref, atol=1e-4, rtol=1e-4), "mismatch vs JAX reference"

    print("KERNEL_OK")
</pallas_src>

<mosaic_0001>
module attributes {stable_mosaic.version = 11 : i64} {
  func.func @_ffn_kernel(%arg0: i32, %arg1: i32, %arg2: memref<16x128xf32, #tpu.memory_space<vmem>>, %arg3: memref<128x128xf32, #tpu.memory_space<vmem>>, %arg4: memref<1x128xf32, #tpu.memory_space<vmem>>, %arg5: memref<128x128xf32, #tpu.memory_space<vmem>>, %arg6: memref<1x128xf32, #tpu.memory_space<vmem>>, %arg7: memref<16x128xf32, #tpu.memory_space<vmem>>, %arg8: memref<16x128xf32, #tpu.memory_space<vmem>>) attributes {dimension_semantics = [#tpu.dimension_semantics<parallel>, #tpu.dimension_semantics<arbitrary>], iteration_bounds = array<i64: 1, 1>, scalar_prefetch = 0 : i64, scratch_operands = 1 : i64, tpu.core_type = #tpu.core_type<tc>, window_params = [{transform_indices = @transform_0, window_bounds = array<i64: 16, 128>}, {transform_indices = @transform_1, window_bounds = array<i64: 128, 128>}, {transform_indices = @transform_2, window_bounds = array<i64: 1, 128>}, {transform_indices = @transform_3, window_bounds = array<i64: 128, 128>}, {pipeline_mode = #tpu.pipeline_mode<synchronous>, transform_indices = @transform_4, window_bounds = array<i64: 1, 128>}, {transform_indices = @transform_5, window_bounds = array<i64: 16, 128>}]} {
    %c0_i32 = arith.constant 0 : i32
    %0 = arith.cmpi eq, %arg1, %c0_i32 : i32
    %1 = arith.extui %0 : i1 to i32
    %c0_i32_0 = arith.constant 0 : i32
    %2 = arith.cmpi ne, %1, %c0_i32_0 : i32
    scf.if %2 {
      %cst_19 = arith.constant 0.000000e+00 : f32
      %30 = vector.broadcast %cst_19 : f32 to vector<16x128xf32>
      %c0_20 = arith.constant 0 : index
      %c0_21 = arith.constant 0 : index
      %31 = vector.load %arg8[%c0_20, %c0_21] : memref<16x128xf32, #tpu.memory_space<vmem>>, vector<16x128xf32>
      tpu.vector_store %arg8[%c0_20, %c0_21], %30 {strides = array<i32>} : memref<16x128xf32, #tpu.memory_space<vmem>>, vector<16x128xf32>,
    } else {
    }
    %c0 = arith.constant 0 : index
    %c0_1 = arith.constant 0 : index
    %3 = vector.load %arg2[%c0, %c0_1] : memref<16x128xf32, #tpu.memory_space<vmem>>, vector<16x128xf32>
    %c0_2 = arith.constant 0 : index
    %c0_3 = arith.constant 0 : index
    %4 = vector.load %arg3[%c0_2, %c0_3] : memref<128x128xf32, #tpu.memory_space<vmem>>, vector<128x128xf32>
    %cst = arith.constant dense<0.000000e+00> : vector<16x128xf32>
    %5 = tpu.matmul %3, %4, %cst {dimension_numbers = #tpu.dot_dimension_numbers<[1], [0], [0], [1], [0, 0, 1, 1], [], []>} : vector<16x128xf32>, vector<128x128xf32>, vector<16x128xf32> -> vector<16x128xf32>
    %c0_4 = arith.constant 0 : index
    %c0_5 = arith.constant 0 : index
    %6 = vector.load %arg4[%c0_4, %c0_5] : memref<1x128xf32, #tpu.memory_space<vmem>>, vector<1x128xf32>
    %7 = vector.broadcast %6 : vector<1x128xf32> to vector<16x128xf32>
    %8 = arith.addf %5, %7 : vector<16x128xf32>
    %cst_6 = arith.constant 5.000000e-01 : f32
    %9 = vector.broadcast %cst_6 : f32 to vector<16x128xf32>
    %10 = arith.mulf %9, %8 : vector<16x128xf32>
    %11 = arith.mulf %8, %8 : vector<16x128xf32>
    %12 = arith.mulf %11, %8 : vector<16x128xf32>
    %cst_7 = arith.constant 4.471500e-02 : f32
    %13 = vector.broadcast %cst_7 : f32 to vector<16x128xf32>
    %14 = arith.mulf %13, %12 : vector<16x128xf32>
    %15 = arith.addf %8, %14 : vector<16x128xf32>
    %cst_8 = arith.constant 0.797884583 : f32
    %16 = vector.broadcast %cst_8 : f32 to vector<16x128xf32>
    %17 = arith.mulf %16, %15 : vector<16x128xf32>
    %18 = math.tanh %17 : vector<16x128xf32>
    %cst_9 = arith.constant 1.000000e+00 : f32
    %19 = vector.broadcast %cst_9 : f32 to vector<16x128xf32>
    %20 = arith.addf %19, %18 : vector<16x128xf32>
    %21 = arith.mulf %10, %20 : vector<16x128xf32>
    %c0_10 = arith.constant 0 : index
    %c0_11 = arith.constant 0 : index
    %22 = vector.load %arg8[%c0_10, %c0_11] : memref<16x128xf32, #tpu.memory_space<vmem>>, vector<16x128xf32>
    %c0_12 = arith.constant 0 : index
    %c0_13 = arith.constant 0 : index
    %23 = vector.load %arg5[%c0_12, %c0_13] : memref<128x128xf32, #tpu.memory_space<vmem>>, vector<128x128xf32>
    %cst_14 = arith.constant dense<0.000000e+00> : vector<16x128xf32>
    %24 = tpu.matmul %21, %23, %cst_14 {dimension_numbers = #tpu.dot_dimension_numbers<[1], [0], [0], [1], [0, 0, 1, 1], [], []>} : vector<16x128xf32>, vector<128x128xf32>, vector<16x128xf32> -> vector<16x128xf32>
    %25 = arith.addf %22, %24 : vector<16x128xf32>
    %c0_15 = arith.constant 0 : index
    %c0_16 = arith.constant 0 : index
    %26 = vector.load %arg8[%c0_15, %c0_16] : memref<16x128xf32, #tpu.memory_space<vmem>>, vector<16x128xf32>
    tpu.vector_store %arg8[%c0_15, %c0_16], %25 {strides = array<i32>} : memref<16x128xf32, #tpu.memory_space<vmem>>, vector<16x128xf32>,
    %c0_i32_17 = arith.constant 0 : i32
    %27 = arith.cmpi eq, %arg1, %c0_i32_17 : i32
    %28 = arith.extui %27 : i1 to i32
    %c0_i32_18 = arith.constant 0 : i32
    %29 = arith.cmpi ne, %28, %c0_i32_18 : i32
    scf.if %29 {
      %c0_19 = arith.constant 0 : index
      %c0_20 = arith.constant 0 : index
      %30 = vector.load %arg8[%c0_19, %c0_20] : memref<16x128xf32, #tpu.memory_space<vmem>>, vector<16x128xf32>
      %c0_21 = arith.constant 0 : index
      %c0_22 = arith.constant 0 : index
      %31 = vector.load %arg6[%c0_21, %c0_22] : memref<1x128xf32, #tpu.memory_space<vmem>>, vector<1x128xf32>
      %32 = vector.broadcast %31 : vector<1x128xf32> to vector<16x128xf32>
      %33 = arith.addf %30, %32 : vector<16x128xf32>
      %c0_23 = arith.constant 0 : index
      %c0_24 = arith.constant 0 : index
      %34 = vector.load %arg7[%c0_23, %c0_24] : memref<16x128xf32, #tpu.memory_space<vmem>>, vector<16x128xf32>
      tpu.vector_store %arg7[%c0_23, %c0_24], %33 {strides = array<i32>} : memref<16x128xf32, #tpu.memory_space<vmem>>, vector<16x128xf32>,
    } else {
    }
    return
  }
  func.func @transform_0(%arg0: i32, %arg1: i32) -> (i32, i32) {
    %c0_i32 = arith.constant 0 : i32
    %c0_i32_0 = arith.constant 0 : i32
    return %arg0, %c0_i32 : i32, i32
  }
  func.func @transform_1(%arg0: i32, %arg1: i32) -> (i32, i32) {
    %c0_i32 = arith.constant 0 : i32
    %c0_i32_0 = arith.constant 0 : i32
    return %c0_i32, %arg1 : i32, i32
  }
  func.func @transform_2(%arg0: i32, %arg1: i32) -> (i32, i32) {
    %c0_i32 = arith.constant 0 : i32
    %c0_i32_0 = arith.constant 0 : i32
    return %c0_i32, %arg1 : i32, i32
  }
  func.func @transform_3(%arg0: i32, %arg1: i32) -> (i32, i32) {
    %c0_i32 = arith.constant 0 : i32
    %c0_i32_0 = arith.constant 0 : i32
    return %arg1, %c0_i32 : i32, i32
  }
  func.func @transform_4(%arg0: i32, %arg1: i32) -> (i32, i32) {
    %c0_i32 = arith.constant 0 : i32
    %c0_i32_0 = arith.constant 0 : i32
    %c0_i32_1 = arith.constant 0 : i32
    return %c0_i32, %c0_i32_0 : i32, i32
  }
  func.func @transform_5(%arg0: i32, %arg1: i32) -> (i32, i32) {
    %c0_i32 = arith.constant 0 : i32
    %c0_i32_0 = arith.constant 0 : i32
    return %arg0, %c0_i32 : i32, i32
  }
}

</mosaic_0001>

<bundles_post_ra>
// kernel: feed_forward.1
= control target key start
LH: loop header
LB: loop body
LE: loop exit
PB: predicated region body
PF: predicated region fallthrough
CT: control target
= control target key end

     0   :  { %s581_s1 = inlined_call_operand.vmem [shape: f32[128,128], index: 1, kind: input, shape index: {}]   ;;  %s582_s0 = inlined_call_operand.vmem [shape: f32[16,128], index: 0, kind: input, shape index: {}]   ;;  %s583_s3 = inlined_call_operand.vmem [shape: f32[128,128], index: 3, kind: input, shape index: {}]   ;;  %s584_s2 = inlined_call_operand.vmem [shape: f32[1,128], index: 2, kind: input, shape index: {}]   ;;  %s585_s4 = inlined_call_operand.vmem [shape: f32[1,128], index: 4, kind: input, shape index: {}]   ;;  %s586_s5 = inlined_call_operand.vmem [shape: f32[16,128], index: 5, kind: output, shape index: {}]  }
   0x1   :  { %v28_v0 = vld [vmem:[%s581_s1] sm:$0xff]  ;;  %v29_v1 = vld [vmem:[%s581_s1 + $0x8] sm:$0xff]  ;;  %v30_v2 = vld [vmem:[%s581_s1 + $0x10] sm:$0xff] }
   0x2   :  { %v369_v3 = vpack.c.bf16 %v29_v1, %v28_v0  ;;  %v31_v4 = vld [vmem:[%s581_s1 + $0x18] sm:$0xff]  ;;  %v32_v6 = vld [vmem:[%s581_s1 + $0x20] sm:$0xff]  ;;  %v33_v7 = vld [vmem:[%s581_s1 + $0x28] sm:$0xff] }
   0x3   :  { %v373_v5 = vpack.c.bf16 %v31_v4, %v30_v2  ;;  %v377_v8 = vpack.c.bf16 %v33_v7, %v32_v6  ;;  %v34_v9 = vld [vmem:[%s581_s1 + $0x30] sm:$0xff]  ;;  %v26_v10 = vld [vmem:[%s582_s0] sm:$0xff]  ;;  %v35_v11 = vld [vmem:[%s581_s1 + $0x38] sm:$0xff] }
   0x4   :  { %370 = vmatprep.subr.bf16.mxu0 %v369_v3  ;;  %331 = vmatprep.mubr.f32.mxu0 %v26_v10  ;;  %v146_v12 = vld [vmem:[%s583_s3] sm:$0xff]  ;;  %v147_v13 = vld [vmem:[%s583_s3 + $0x8] sm:$0xff]  ;;  %v381_v15 = vpack.c.bf16 %v35_v11, %v34_v9  ;;  %v38_v19 = vld [vmem:[%s581_s1 + $0x50] sm:$0xff] }
   0x5   :  { %372 = vmatpush3.bf16.msra.mxu0 %v369_v3  ;;  %v401_v14 = vpack.c.bf16 %v147_v13, %v146_v12  ;;  %v36_v16 = vld [vmem:[%s581_s1 + $0x40] sm:$0xff]  ;;  %v37_v17 = vld [vmem:[%s581_s1 + $0x48] sm:$0xff]  ;;  %v39_v20 = vld [vmem:[%s581_s1 + $0x58] sm:$0xff] }
   0x6   :  { %374 = vmatprep.subr.bf16.mxu0 %v373_v5  ;;  %v385_v18 = vpack.c.bf16 %v37_v17, %v36_v16  ;;  %v389_v21 = vpack.c.bf16 %v39_v20, %v38_v19  ;;  %v40_v22 = vld [vmem:[%s581_s1 + $0x60] sm:$0xff]  ;;  %v41_v23 = vld [vmem:[%s581_s1 + $0x68] sm:$0xff]  ;;  %v42_v25 = vld [vmem:[%s581_s1 + $0x70] sm:$0xff] }
   0x7   :  { %402 = vmatprep.subr.bf16.mxu1 %v401_v14  ;;  %v393_v24 = vpack.c.bf16 %v41_v23, %v40_v22  ;;  %v43_v26 = vld [vmem:[%s581_s1 + $0x78] sm:$0xff]  ;;  %v27_v28 = vld [vmem:[%s582_s0 + $0x8] sm:$0xff]  ;;  %v148_v29 = vld [vmem:[%s583_s3 + $0x10] sm:$0xff] }
   0x8   :  { %404 = vmatpush3.bf16.msra.mxu1 %v401_v14  ;;  %v397_v27 = vpack.c.bf16 %v43_v26, %v42_v25  ;;  %v149_v30 = vld [vmem:[%s583_s3 + $0x18] sm:$0xff]  ;;  %v150_v32 = vld [vmem:[%s583_s3 + $0x20] sm:$0xff]  ;;  %v151_v33 = vld [vmem:[%s583_s3 + $0x28] sm:$0xff] }
   0x9   :  { %376 = vmatpush3.bf16.msra.mxu0 %v373_v5  ;;  %v405_v31 = vpack.c.bf16 %v149_v30, %v148_v29  ;;  %v409_v34 = vpack.c.bf16 %v151_v33, %v150_v32  ;;  %v152_v35 = vld [vmem:[%s583_s3 + $0x30] sm:$0xff]  ;;  %v153_v36 = vld [vmem:[%s583_s3 + $0x38] sm:$0xff]  ;;  %v154_v38 = vld [vmem:[%s583_s3 + $0x40] sm:$0xff] }
   0xa   :  { %378 = vmatprep.subr.bf16.mxu0 %v377_v8  ;;  %v413_v37 = vpack.c.bf16 %v153_v36, %v152_v35  ;;  %v155_v39 = vld [vmem:[%s583_s3 + $0x48] sm:$0xff]  ;;  %v156_v40 = vld [vmem:[%s583_s3 + $0x50] sm:$0xff]  ;;  %v157_v42 = vld [vmem:[%s583_s3 + $0x58] sm:$0xff] }
   0xb   :  { %406 = vmatprep.subr.bf16.mxu1 %v405_v31  ;;  %v417_v41 = vpack.c.bf16 %v155_v39, %v154_v38  ;;  %v421_v43 = vpack.c.bf16 %v157_v42, %v156_v40  ;;  %v158_v44 = vld [vmem:[%s583_s3 + $0x60] sm:$0xff]  ;;  %v159_v45 = vld [vmem:[%s583_s3 + $0x68] sm:$0xff]  ;;  %v160_v47 = vld [vmem:[%s583_s3 + $0x70] sm:$0xff] }
   0xc   :  { %408 = vmatpush3.bf16.msra.mxu1 %v405_v31  ;;  %v425_v46 = vpack.c.bf16 %v159_v45, %v158_v44  ;;  %v161_v48 = vld [vmem:[%s583_s3 + $0x78] sm:$0xff]  ;;  %v261_v50 = vld [vmem:[%s584_s2] ss:$0 sm:$0xff] }
   0xd   :  { %380 = vmatpush3.bf16.msra.mxu0 %v377_v8  ;;  %410 = vmatprep.subr.bf16.mxu1 %v409_v34  ;;  %v429_v49 = vpack.c.bf16 %v161_v48, %v160_v47  ;;  %v262_v9 = vld [vmem:[%s585_s4] ss:$0 sm:$0xff] }
   0xe   :  { %382 = vmatprep.subr.bf16.mxu0 %v381_v15 }
  0x10   :  { %412 = vmatpush3.bf16.msra.mxu1 %v409_v34 }
  0x11   :  { %384 = vmatpush3.bf16.msra.mxu0 %v381_v15  ;;  %414 = vmatprep.subr.bf16.mxu1 %v413_v37 }
  0x12   :  { %386 = vmatprep.subr.bf16.mxu0 %v385_v18 }
  0x14   :  { %416 = vmatpush3.bf16.msra.mxu1 %v413_v37 }
  0x15   :  { %388 = vmatpush3.bf16.msra.mxu0 %v385_v18  ;;  %418 = vmatprep.subr.bf16.mxu1 %v417_v41 }
  0x16   :  { %390 = vmatprep.subr.bf16.mxu0 %v389_v21 }
  0x18   :  { %420 = vmatpush3.bf16.msra.mxu1 %v417_v41 }
  0x19   :  { %392 = vmatpush3.bf16.msra.mxu0 %v389_v21  ;;  %422 = vmatprep.subr.bf16.mxu1 %v421_v43 }
  0x1a   :  { %394 = vmatprep.subr.bf16.mxu0 %v393_v24 }
  0x1c   :  { %424 = vmatpush3.bf16.msra.mxu1 %v421_v43 }
  0x1d   :  { %396 = vmatpush3.bf16.msra.mxu0 %v393_v24  ;;  %426 = vmatprep.subr.bf16.mxu1 %v425_v46 }
  0x1e   :  { %398 = vmatprep.subr.bf16.mxu0 %v397_v27 }
  0x20   :  { %428 = vmatpush3.bf16.msra.mxu1 %v425_v46 }
  0x21   :  { %400 = vmatpush3.bf16.msra.mxu0 %v397_v27  ;;  %430 = vmatprep.subr.bf16.mxu1 %v429_v49 }
  0x24   :  { %332 = vmatmul.mubr.f32.vlgmr.msra.gmra.mrb[0].mxu0 %v27_v28  ;;  %432 = vmatpush3.bf16.msra.mxu1 %v429_v49 }
  0xf7   :  { %v333_v51 = vpop.f32.mrb[0].mxu0 }
  0xf8   :  { %v123_v52 = vadd.f32 %v333_v51, %v261_v50  ;;  %v117_v53 = vpop.f32.mrb[1].mxu0 }
  0xf9   :  { %v118_v54 = vadd.f32 %v261_v50, %v117_v53 }
  0xfa   :  { %v129_v55 = vmul.f32 %v123_v52, %v123_v52  ;;  %v127_v6 = vmul.f32 0.5, %v123_v52 }
  0xfb   :  { %v128_v56 = vmul.f32 %v118_v54, %v118_v54  ;;  %v126_v4 = vmul.f32 0.5, %v118_v54 }
  0xfc   :  { %v131_v57 = vmul.f32 %v129_v55, %v123_v52 }
  0xfd   :  { %v130_v58 = vmul.f32 %v128_v56, %v118_v54 }
  0xfe   :  { %v133_v59 = vmul.f32 0.044715, %v131_v57 }
  0xff   :  { %v132_v60 = vmul.f32 0.044715, %v130_v58 }
 0x100   :  { %v135_v61 = vadd.f32 %v133_v59, %v123_v52 }
 0x101   :  { %v134_v62 = vadd.f32 %v132_v60, %v118_v54 }
 0x102   :  { %v137_v63 = vmul.f32 0.7978846, %v135_v61 }
 0x103   :  { %v136_v0 = vmul.f32 0.7978846, %v134_v62 }
 0x104   :  { %433 = vtanh.f32 %v137_v63 }
 0x105   :  { %435 = vtanh.f32 %v136_v0 }
 0x10e   :  { %v434_v1 = vpop.eup %433 }
 0x10f   :  { %v436_v2 = vpop.eup %435  ;;  %v141_v3 = vadd.f32 1.0, %v434_v1 }
 0x110   :  { %v140_v5 = vadd.f32 1.0, %v436_v2 }
 0x111   :  { %v143_v8 = vmul.f32 %v141_v3, %v127_v6 }
 0x112   :  { %v142_v7 = vmul.f32 %v140_v5, %v126_v4 }
 0x114   :  { %366 = vmatprep.mubr.f32.mxu1 %v142_v7 }
 0x115   :  { %367 = vmatmul.mubr.f32.vlgmr.msra.gmra.mrb[0].mxu1 %v143_v8 }
 0x1e8   :  { %v368_v10 = vpop.f32.mrb[0].mxu1 }
 0x1e9   :  { %v254_v11 = vadd.f32 %v368_v10, %v262_v9  ;;  %v228_v12 = vpop.f32.mrb[1].mxu1 }
 0x1ea   :  { %v253_v13 = vadd.f32 %v262_v9, %v228_v12 }
 0x1eb   :  { %256 = vst [vmem:[%s586_s5 + $0x8] sm:$0xff] %v254_v11 }
 0x1ec   :  { %255 = vst [vmem:[%s586_s5] sm:$0xff] %v253_v13 }

</bundles_post_ra>
